<compile_context>
chip_gen: v6e
topology: v6e:2x2x1
jax: 0.10.0
libtpu: 0.0.40
codegen_flags: <defaults>
</compile_context>

<pallas_src>
import functools

import jax
import jax.numpy as jnp
from jax.experimental import pallas as pl
from jax.experimental.pallas import tpu as pltpu

LANE = 128  # vreg lane width


def _round_up(x, m):
    return -(-x // m) * m


def _default_config():
    """(rows_per_tile, num_splits) tuned per TPU generation."""
    rows_per_tile, num_splits = 4096, 2            # generic / v4 / v5p (megacore)
    try:
        kind = jax.devices()[0].device_kind.lower()
    except Exception:
        return rows_per_tile, num_splits
    if "v5e" in kind or "v5 lite" in kind or "v5lite" in kind:
        rows_per_tile, num_splits = 2048, 1        # 16 MiB scoped VMEM default, 1 TC
    elif "v6" in kind:
        rows_per_tile, num_splits = 8192, 1        # 1 TC; big tiles, already near roofline
    elif "v7" in kind:
        rows_per_tile, num_splits = 8192, 2        # 3.2 TB/s: amortize step overhead; 2 TCs
    return rows_per_tile, num_splits


def _mse_kernel(y_ref, x_ref, acc_ref, *, n_inner, valid_rows, acc_rows):
    """Accumulate per-lane partial sums of (post_process(y) - x)^2.

    y_ref, x_ref : (tile_rows, LANE) VMEM tiles
    acc_ref      : (1, acc_rows, LANE) f32 output block, resident across the
                   inner (reduction) grid axis for the current split.
    """
    c = pl.program_id(0)          # split index ("parallel")
    i = pl.program_id(1)          # reduction step ("arbitrary")
    tile_rows = y_ref.shape[0]

    @pl.when(i == 0)
    def _():
        acc_ref[...] = jnp.zeros_like(acc_ref)

    t = c * n_inner + i           # *unclamped* logical tile index
    row0 = t * tile_rows

    def sq_err():
        y = jnp.clip(y_ref[...].astype(jnp.float32), 0.0, 1.0)   # post_process
        x = x_ref[...].astype(jnp.float32)
        d = y - x
        return d * d

    is_full = row0 + tile_rows <= valid_rows

    @pl.when(is_full)             # interior tile: mask-free fast path
    def _():
        sq = sq_err()
        partial = jnp.sum(sq.reshape(-1, acc_rows, LANE), axis=0)
        acc_ref[...] += partial.reshape(1, acc_rows, LANE)

    @pl.when(jnp.logical_not(is_full))   # boundary / clamped-overshoot tile
    def _():
        sq = sq_err()
        row_ids = row0 + jax.lax.broadcasted_iota(jnp.int32, sq.shape, 0)
        sq = jnp.where(row_ids < valid_rows, sq, 0.0)
        partial = jnp.sum(sq.reshape(-1, acc_rows, LANE), axis=0)
        acc_ref[...] += partial.reshape(1, acc_rows, LANE)


@functools.partial(jax.jit, static_argnames=("rows_per_tile", "num_splits"))
def _reconstruction_loss_impl(outputs, inputs, rows_per_tile, num_splits):
    assert outputs.shape == inputs.shape
    assert rows_per_tile % 64 == 0 and rows_per_tile >= 64
    total = outputs.size

    y = outputs.reshape(-1)
    x = inputs.reshape(-1)

    rows = total // LANE
    rem = total - rows * LANE

    # Ragged tail (< 128 elements): tiny XLA sum -> no whole-tensor pad.
    if rem:
        ty = jnp.clip(y[rows * LANE:].astype(jnp.float32), 0.0, 1.0)
        tx = x[rows * LANE:].astype(jnp.float32)
        tail_sum = jnp.sum((ty - tx) ** 2)
    else:
        tail_sum = jnp.float32(0.0)

    if rows == 0:
        return tail_sum / jnp.float32(total)

    # Lane-dense, 128-aligned prefix (reshape is free when rem == 0).
    # NOTE: for rem != 0 the prefix slice is what XLA materializes instead of
    # the old full pad; a fully zero-copy ragged path would need a manual-DMA
    # (memory_space=pl.ANY) kernel, not worth it for a <128-element tail case.
    if rem:
        y2d = y[: rows * LANE].reshape(rows, LANE)
        x2d = x[: rows * LANE].reshape(rows, LANE)
    else:
        y2d = y.reshape(rows, LANE)
        x2d = x.reshape(rows, LANE)

    # Tile height: big for large tensors, shrunk (multiple of 16 so bf16 also
    # lowers) for tiny ones.  Wide accumulator (64 sublanes) when possible.
    tile_rows = min(rows_per_tile, _round_up(rows, 16))
    acc_rows = 64 if tile_rows % 64 == 0 else 16

    n_tiles = -(-rows // tile_rows)
    splits = num_splits if n_tiles >= num_splits else 1
    n_inner = -(-n_tiles // splits)

    def in_map(c, i):
        # Clamp so the DMA never starts past the array end; the kernel masks
        # via the *unclamped* logical index, so the duplicate block adds 0.
        return (jnp.minimum(c * n_inner + i, n_tiles - 1), 0)

    kernel = functools.partial(
        _mse_kernel, n_inner=n_inner, valid_rows=rows, acc_rows=acc_rows)

    partial_sums = pl.pallas_call(
        kernel,
        out_shape=jax.ShapeDtypeStruct((splits, acc_rows, LANE), jnp.float32),
        grid_spec=pltpu.PrefetchScalarGridSpec(
            num_scalar_prefetch=0,
            grid=(splits, n_inner),
            in_specs=[
                pl.BlockSpec((tile_rows, LANE), in_map),
                pl.BlockSpec((tile_rows, LANE), in_map),
            ],
            out_specs=pl.BlockSpec((1, acc_rows, LANE), lambda c, i: (c, 0, 0)),
        ),
        compiler_params=pltpu.CompilerParams(
            dimension_semantics=("parallel", "arbitrary")),
        cost_estimate=pl.CostEstimate(
            flops=3 * total,
            transcendentals=0,
            bytes_accessed=total * (outputs.dtype.itemsize + inputs.dtype.itemsize)),
    )(y2d, x2d)

    # Single tiny cross-lane collapse outside the kernel.
    return (jnp.sum(partial_sums) + tail_sum) / jnp.float32(total)


def reconstruction_loss(outputs, inputs, rows_per_tile=None, num_splits=None):
    """MSELoss(post_process(outputs), inputs), mean over all elements."""
    d_rows, d_splits = _default_config()
    if rows_per_tile is None:
        rows_per_tile = d_rows
    if num_splits is None:
        num_splits = d_splits
    return _reconstruction_loss_impl(
        outputs, inputs, rows_per_tile=rows_per_tile, num_splits=num_splits)


def _reference(outputs, inputs):
    o = jnp.clip(outputs.astype(jnp.float32), 0.0, 1.0)
    x = inputs.astype(jnp.float32)
    return jnp.mean((o - x) ** 2)


if __name__ == "__main__":
    key = jax.random.PRNGKey(0)
    ks = jax.random.split(key, 10)

    def check(o, x, rtol=1e-5, atol=1e-6, **kw):
        got = jax.block_until_ready(reconstruction_loss(o, x, **kw))
        want = _reference(o, x)
        assert jnp.allclose(got, want, rtol=rtol, atol=atol), (got, want)

    # 1) module-style NCHW tensors, aligned total (mask-free fast path)
    o1 = jax.random.normal(ks[0], (2, 4, 16, 16), jnp.float32)
    x1 = jax.random.uniform(ks[1], (2, 4, 16, 16), jnp.float32)
    check(o1, x1)

    # 2) ragged total (% 128 != 0): aligned-prefix kernel + tiny XLA tail sum
    o2 = jax.random.normal(ks[2], (2, 3, 15, 17), jnp.float32)
    x2 = jax.random.uniform(ks[3], (2, 3, 15, 17), jnp.float32)
    check(o2, x2)

    # 3) multi-tile + 2-way split + clamped overshoot block (small tile forces it)
    o3 = jax.random.normal(ks[4], (4, 4, 32, 34), jnp.float32)
    x3 = jax.random.uniform(ks[5], (4, 4, 32, 34), jnp.float32)
    check(o3, x3, rows_per_tile=64, num_splits=2)

    # 4) larger aligned batch with the device-default config
    o4 = jax.random.normal(ks[6], (8, 3, 128, 128), jnp.float32)
    x4 = jax.random.uniform(ks[7], (8, 3, 128, 128), jnp.float32)
    check(o4, x4)

    # 5) bf16 inputs
    o5 = jax.random.normal(ks[8], (2, 4, 32, 32), jnp.bfloat16)
    x5 = jax.random.uniform(ks[9], (2, 4, 32, 32), jnp.bfloat16)
    check(o5, x5, rtol=1e-3, atol=1e-5)

    print("KERNEL_OK")
</pallas_src>

<mosaic_0001>
module attributes {stable_mosaic.version = 11 : i64} {
  func.func @_mse_kernel(%arg0: i32, %arg1: i32, %arg2: memref<16x128xf32, #tpu.memory_space<vmem>>, %arg3: memref<16x128xf32, #tpu.memory_space<vmem>>, %arg4: memref<1x16x128xf32, #tpu.memory_space<vmem>>) attributes {dimension_semantics = [#tpu.dimension_semantics<parallel>, #tpu.dimension_semantics<arbitrary>], iteration_bounds = array<i64: 1, 1>, scalar_prefetch = 0 : i64, scratch_operands = 0 : i64, tpu.core_type = #tpu.core_type<tc>, window_params = [{transform_indices = @transform_0, window_bounds = array<i64: 16, 128>}, {transform_indices = @transform_1, window_bounds = array<i64: 16, 128>}, {transform_indices = @transform_2, window_bounds = array<i64: 1, 16, 128>}]} {
    %c0_i32 = arith.constant 0 : i32
    %0 = arith.cmpi eq, %arg1, %c0_i32 : i32
    %1 = arith.extui %0 : i1 to i32
    %c0_i32_0 = arith.constant 0 : i32
    %2 = arith.cmpi ne, %1, %c0_i32_0 : i32
    scf.if %2 {
      %cst = arith.constant 0.000000e+00 : f32
      %13 = vector.broadcast %cst : f32 to vector<1x16x128xf32>
      %c0 = arith.constant 0 : index
      %c0_5 = arith.constant 0 : index
      %c0_6 = arith.constant 0 : index
      %14 = vector.load %arg4[%c0, %c0_5, %c0_6] : memref<1x16x128xf32, #tpu.memory_space<vmem>>, vector<1x16x128xf32>
      tpu.vector_store %arg4[%c0, %c0_5, %c0_6], %13 {strides = array<i32>} : memref<1x16x128xf32, #tpu.memory_space<vmem>>, vector<1x16x128xf32>,
    } else {
    }
    %c1_i32 = arith.constant 1 : i32
    %3 = arith.muli %arg0, %c1_i32 : i32
    %4 = arith.addi %3, %arg1 : i32
    %c16_i32 = arith.constant 16 : i32
    %5 = arith.muli %4, %c16_i32 : i32
    %c16_i32_1 = arith.constant 16 : i32
    %6 = arith.addi %5, %c16_i32_1 : i32
    %c16_i32_2 = arith.constant 16 : i32
    %7 = arith.cmpi sle, %6, %c16_i32_2 : i32
    %8 = arith.extui %7 : i1 to i32
    %c0_i32_3 = arith.constant 0 : i32
    %9 = arith.cmpi ne, %8, %c0_i32_3 : i32
    scf.if %9 {
      %c0 = arith.constant 0 : index
      %c0_5 = arith.constant 0 : index
      %13 = vector.load %arg2[%c0, %c0_5] : memref<16x128xf32, #tpu.memory_space<vmem>>, vector<16x128xf32>
      %cst = arith.constant 0.000000e+00 : f32
      %cst_6 = arith.constant 1.000000e+00 : f32
      %14 = vector.broadcast %cst : f32 to vector<16x128xf32>
      %15 = arith.maximumf %14, %13 : vector<16x128xf32>
      %16 = vector.broadcast %cst_6 : f32 to vector<16x128xf32>
      %17 = arith.minimumf %16, %15 : vector<16x128xf32>
      %c0_7 = arith.constant 0 : index
      %c0_8 = arith.constant 0 : index
      %18 = vector.load %arg3[%c0_7, %c0_8] : memref<16x128xf32, #tpu.memory_space<vmem>>, vector<16x128xf32>
      %19 = arith.subf %17, %18 : vector<16x128xf32>
      %20 = arith.mulf %19, %19 : vector<16x128xf32>
      %21 = vector.shape_cast %20 : vector<16x128xf32> to vector<1x16x128xf32>
      %cst_9 = arith.constant dense<0.000000e+00> : vector<16x128xf32>
      %22 = vector.multi_reduction <add>, %21, %cst_9 [0] : vector<1x16x128xf32> to vector<16x128xf32>
      %c0_10 = arith.constant 0 : index
      %c0_11 = arith.constant 0 : index
      %c0_12 = arith.constant 0 : index
      %23 = vector.load %arg4[%c0_10, %c0_11, %c0_12] : memref<1x16x128xf32, #tpu.memory_space<vmem>>, vector<1x16x128xf32>
      %24 = vector.shape_cast %22 : vector<16x128xf32> to vector<1x16x128xf32>
      %25 = arith.addf %23, %24 : vector<1x16x128xf32>
      %c0_13 = arith.constant 0 : index
      %c0_14 = arith.constant 0 : index
      %c0_15 = arith.constant 0 : index
      %26 = vector.load %arg4[%c0_13, %c0_14, %c0_15] : memref<1x16x128xf32, #tpu.memory_space<vmem>>, vector<1x16x128xf32>
      tpu.vector_store %arg4[%c0_13, %c0_14, %c0_15], %25 {strides = array<i32>} : memref<1x16x128xf32, #tpu.memory_space<vmem>>, vector<1x16x128xf32>,
    } else {
    }
    %true = arith.constant true
    %10 = arith.xori %7, %true : i1
    %11 = arith.extui %10 : i1 to i32
    %c0_i32_4 = arith.constant 0 : i32
    %12 = arith.cmpi ne, %11, %c0_i32_4 : i32
    scf.if %12 {
      %c0 = arith.constant 0 : index
      %c0_5 = arith.constant 0 : index
      %13 = vector.load %arg2[%c0, %c0_5] : memref<16x128xf32, #tpu.memory_space<vmem>>, vector<16x128xf32>
      %cst = arith.constant 0.000000e+00 : f32
      %cst_6 = arith.constant 1.000000e+00 : f32
      %14 = vector.broadcast %cst : f32 to vector<16x128xf32>
      %15 = arith.maximumf %14, %13 : vector<16x128xf32>
      %16 = vector.broadcast %cst_6 : f32 to vector<16x128xf32>
      %17 = arith.minimumf %16, %15 : vector<16x128xf32>
      %c0_7 = arith.constant 0 : index
      %c0_8 = arith.constant 0 : index
      %18 = vector.load %arg3[%c0_7, %c0_8] : memref<16x128xf32, #tpu.memory_space<vmem>>, vector<16x128xf32>
      %19 = arith.subf %17, %18 : vector<16x128xf32>
      %20 = arith.mulf %19, %19 : vector<16x128xf32>
      %21 = tpu.iota {dimensions = array<i32: 0>} : vector<16x128xi32>
      %22 = vector.broadcast %5 : i32 to vector<16x128xi32>
      %23 = arith.addi %22, %21 : vector<16x128xi32>
      %c16_i32_9 = arith.constant 16 : i32
      %24 = vector.broadcast %c16_i32_9 : i32 to vector<16x128xi32>
      %25 = arith.cmpi slt, %23, %24 : vector<16x128xi32>
      %cst_10 = arith.constant 0.000000e+00 : f32
      %26 = vector.broadcast %cst_10 : f32 to vector<16x128xf32>
      %27 = arith.select %25, %20, %26 : vector<16x128xi1>, vector<16x128xf32>
      %28 = vector.shape_cast %27 : vector<16x128xf32> to vector<1x16x128xf32>
      %cst_11 = arith.constant dense<0.000000e+00> : vector<16x128xf32>
      %29 = vector.multi_reduction <add>, %28, %cst_11 [0] : vector<1x16x128xf32> to vector<16x128xf32>
      %c0_12 = arith.constant 0 : index
      %c0_13 = arith.constant 0 : index
      %c0_14 = arith.constant 0 : index
      %30 = vector.load %arg4[%c0_12, %c0_13, %c0_14] : memref<1x16x128xf32, #tpu.memory_space<vmem>>, vector<1x16x128xf32>
      %31 = vector.shape_cast %29 : vector<16x128xf32> to vector<1x16x128xf32>
      %32 = arith.addf %30, %31 : vector<1x16x128xf32>
      %c0_15 = arith.constant 0 : index
      %c0_16 = arith.constant 0 : index
      %c0_17 = arith.constant 0 : index
      %33 = vector.load %arg4[%c0_15, %c0_16, %c0_17] : memref<1x16x128xf32, #tpu.memory_space<vmem>>, vector<1x16x128xf32>
      tpu.vector_store %arg4[%c0_15, %c0_16, %c0_17], %32 {strides = array<i32>} : memref<1x16x128xf32, #tpu.memory_space<vmem>>, vector<1x16x128xf32>,
    } else {
    }
    return
  }
  func.func @transform_0(%arg0: i32, %arg1: i32) -> (i32, i32) {
    %c1_i32 = arith.constant 1 : i32
    %0 = arith.muli %arg0, %c1_i32 : i32
    %1 = arith.addi %0, %arg1 : i32
    %c0_i32 = arith.constant 0 : i32
    %2 = arith.minsi %1, %c0_i32 : i32
    %c0_i32_0 = arith.constant 0 : i32
    %c0_i32_1 = arith.constant 0 : i32
    return %2, %c0_i32_0 : i32, i32
  }
  func.func @transform_1(%arg0: i32, %arg1: i32) -> (i32, i32) {
    %c1_i32 = arith.constant 1 : i32
    %0 = arith.muli %arg0, %c1_i32 : i32
    %1 = arith.addi %0, %arg1 : i32
    %c0_i32 = arith.constant 0 : i32
    %2 = arith.minsi %1, %c0_i32 : i32
    %c0_i32_0 = arith.constant 0 : i32
    %c0_i32_1 = arith.constant 0 : i32
    return %2, %c0_i32_0 : i32, i32
  }
  func.func @transform_2(%arg0: i32, %arg1: i32) -> (i32, i32, i32) {
    %c0_i32 = arith.constant 0 : i32
    %c0_i32_0 = arith.constant 0 : i32
    %c0_i32_1 = arith.constant 0 : i32
    return %arg0, %c0_i32, %c0_i32_0 : i32, i32, i32
  }
}

</mosaic_0001>

<bundles_post_ra>
// kernel: _reconstruction_loss_impl.1
= control target key start
LH: loop header
LB: loop body
LE: loop exit
PB: predicated region body
PF: predicated region fallthrough
CT: control target
= control target key end

     0   :  { %s192_s0 = inlined_call_operand.vmem [shape: f32[16,128], index: 0, kind: input, shape index: {}]   ;;  %s193_s1 = inlined_call_operand.vmem [shape: f32[16,128], index: 1, kind: input, shape index: {}]   ;;  %s194_s2 = inlined_call_operand.vmem [shape: f32[1,16,128], index: 2, kind: output, shape index: {}]  }
   0x1   :  { %v88_v0 = vld [vmem:[%s192_s0] sm:$0xff]  ;;  %v89_v1 = vld [vmem:[%s192_s0 + $0x8] sm:$0xff] }
   0x2   :  { %v90_v2 = vmax.f32 %v88_v0, 0.0  ;;  %v91_v3 = vmax.f32 %v89_v1, 0.0  ;;  %v94_v4 = vld [vmem:[%s193_s1] sm:$0xff]  ;;  %v95_v5 = vld [vmem:[%s193_s1 + $0x8] sm:$0xff] }
   0x4   :  { %v92_v6 = vmin.f32 %v90_v2, 1.0  ;;  %v93_v7 = vmin.f32 %v91_v3, 1.0 }
   0x6   :  { %v96_v8 = vsub.f32 %v92_v6, %v94_v4  ;;  %v97_v9 = vsub.f32 %v93_v7, %v95_v5 }
   0x8   :  { %v98_v10 = vmul.f32 %v96_v8, %v96_v8  ;;  %v99_v11 = vmul.f32 %v97_v9, %v97_v9 }
   0xa   :  { %106 = vst [vmem:[%s194_s2] sm:$0xff] %v98_v10  ;;  %107 = vst [vmem:[%s194_s2 + $0x8] sm:$0xff] %v99_v11 }

</bundles_post_ra>
